<compile_context>
chip_gen: v6e
topology: v6e:2x2x1
jax: 0.10.0
libtpu: 0.0.40
codegen_flags: <defaults>
</compile_context>

<pallas_src>
import functools

import numpy as np

import jax
import jax.numpy as jnp
from jax.experimental import pallas as pl
from jax.experimental.pallas import tpu as pltpu

_LANES = 128
_SUBLANES = 8
_MAX_TILE_ROWS = 2048              # 2048*128 = 256K elems: 512 KiB/bf16 buffer, 1 MiB/f32 buffer.
_DENSE_REC_BYTES_LIMIT = 8 << 20   # dense (L,L) Laplacian path only below this resident size.


def _cdiv(a, b):
    return (a + b - 1) // b


def _round_up(x, m):
    return _cdiv(x, m) * m


def _device_kind():
    try:
        return jax.devices()[0].device_kind.lower()
    except Exception:
        return ""


# --------------------------------------------------------------------------------------------
# BCE-with-logits mean (the loss_fn term) — EUP-bound streaming reduction.
# --------------------------------------------------------------------------------------------
def _bce_sum_kernel(x_ref, y_ref, out_ref, acc_ref, *,
                    tile_rows, steps_per_split, n_elems, needs_mask, use_bf16_eup):
    c = pl.program_id(0)   # TensorCore split (parallel axis)
    i = pl.program_id(1)   # row-block sweep (arbitrary / reduction axis)

    @pl.when(i == 0)
    def _init():
        acc_ref[...] = jnp.zeros_like(acc_ref)

    # Numerically-stable BCE-with-logits: max(x,0) - x*y + log1p(exp(-|x|)); math in f32
    # regardless of the (bf16) transfer dtype.
    x = x_ref[...].astype(jnp.float32)
    y = y_ref[...].astype(jnp.float32)
    neg_abs = -jnp.abs(x)
    if use_bf16_eup:
        # v6e/v7x: bf16 EUP (~2x transcendental rate) for the binding unit; ~1e-3 relative error
        # on the BCE term, accumulation stays f32.  Not used on v5e (no bf16 EUP/VPU).
        softplus = jnp.log1p(jnp.exp(neg_abs.astype(jnp.bfloat16))).astype(jnp.float32)
    else:
        softplus = jnp.log1p(jnp.exp(neg_abs))
    bce = jnp.maximum(x, 0.0) - x * y + softplus

    if needs_mask:
        # Zero the tail: lane padding, ragged last row-block, and v7x split overrun all reduce to
        # "global flat index >= n_elems".  VALU work, free under the EUP bottleneck.
        row = jax.lax.broadcasted_iota(jnp.int32, bce.shape, 0)
        lane = jax.lax.broadcasted_iota(jnp.int32, bce.shape, 1)
        row0 = (c * steps_per_split + i) * tile_rows
        gidx = (row0 + row) * _LANES + lane
        bce = jnp.where(gidx < n_elems, bce, 0.0)

    # Fold the (tile_rows, 128) tile into one (8, 128) vreg with element-wise VALU adds only.
    # The single cross-lane reduction of the partials happens in the tiny wrapper-side jnp.sum.
    acc_ref[...] += bce.reshape(tile_rows // _SUBLANES, _SUBLANES, _LANES).sum(axis=0)

    @pl.when(i == pl.num_programs(1) - 1)
    def _finalize():
        out_ref[0] = acc_ref[...]


def _bce_with_logits_mean(logits, labels):
    """Mean BCE-with-logits over all elements of (B, L), Pallas-backed."""
    n_elems = int(np.prod(logits.shape))
    flat_x = logits.reshape(-1)
    flat_y = labels.reshape(-1)

    rows = max(_SUBLANES, _round_up(_cdiv(n_elems, _LANES), _SUBLANES))  # sublane-aligned rows
    padded = rows * _LANES
    if padded == n_elems:
        # Aligned case: reshape is layout-free — no extra HBM copy of the dominant streams.
        x2 = flat_x.reshape(rows, _LANES)
        y2 = flat_y.reshape(rows, _LANES)
    else:
        # Ragged tail: a pad is unavoidable to reach a (rows, 128) layout; padded elements are
        # masked to zero inside the kernel (no sentinel values needed).
        pad = padded - n_elems
        x2 = jnp.pad(flat_x, (0, pad)).reshape(rows, _LANES)
        y2 = jnp.pad(flat_y, (0, pad)).reshape(rows, _LANES)

    tile_rows = min(_MAX_TILE_ROWS, rows)
    n_blocks = _cdiv(rows, tile_rows)

    kind = _device_kind()
    use_bf16_eup = ("v6" in kind) or ("v7" in kind) or ("7x" in kind)
    n_split = 2 if ((("v7" in kind) or ("7x" in kind)) and n_blocks >= 2) else 1
    steps_per_split = _cdiv(n_blocks, n_split)
    covered = n_split * steps_per_split * tile_rows * _LANES
    needs_mask = covered != n_elems

    if n_split * steps_per_split > n_blocks:
        # Clamp so the overrun step of the last split re-reads a valid block; its contribution is
        # masked to zero in-kernel via the (unclamped) global element index.
        def in_map(c, i):
            return (jnp.minimum(c * steps_per_split + i, n_blocks - 1), 0)
    else:
        def in_map(c, i):
            return (c * steps_per_split + i, 0)

    kernel = functools.partial(
        _bce_sum_kernel,
        tile_rows=tile_rows, steps_per_split=steps_per_split,
        n_elems=n_elems, needs_mask=needs_mask, use_bf16_eup=use_bf16_eup)

    # Regime note: EUP-bound (2 transcendentals/element on the single EUP slot), NOT HBM-bound —
    # further tuning should target transcendental throughput / TC parallelism, not bytes.
    cost = pl.CostEstimate(
        flops=6 * n_elems,
        transcendentals=2 * n_elems,
        bytes_accessed=(x2.size * x2.dtype.itemsize + y2.size * y2.dtype.itemsize
                        + n_split * _SUBLANES * _LANES * 4),
    )

    partials = pl.pallas_call(
        kernel,
        out_shape=jax.ShapeDtypeStruct((n_split, _SUBLANES, _LANES), jnp.float32),
        grid=(n_split, steps_per_split),
        in_specs=[
            pl.BlockSpec((tile_rows, _LANES), in_map),   # logits tiles (native dtype transfer)
            pl.BlockSpec((tile_rows, _LANES), in_map),   # labels tiles (native dtype transfer)
        ],
        out_specs=pl.BlockSpec((1, _SUBLANES, _LANES), lambda c, i: (c, 0, 0)),
        scratch_shapes=[pltpu.VMEM((_SUBLANES, _LANES), jnp.float32)],
        compiler_params=pltpu.CompilerParams(
            dimension_semantics=("parallel", "arbitrary")),
        cost_estimate=cost,
    )(x2, y2)

    return jnp.sum(partials) * (1.0 / n_elems)


# --------------------------------------------------------------------------------------------
# Hierarchy regularizer:  sum_{(p,c)} ||e_p - e_c||^2  — separate tiny call, out of the hot loop.
# --------------------------------------------------------------------------------------------
def _pair_laplacian_rec_kernel(emb_ref, w_ref, out_ref):
    # sum_{(p,c)} ||e_p - e_c||^2  ==  sum(E * (W @ E)), W the parent/child pair Laplacian.
    e = emb_ref[...]
    out_ref[0, 0] = jnp.sum(e * jnp.dot(w_ref[...], e, preferred_element_type=jnp.float32))


def _hierarchy_recursive_term(label_emb, hier_relation):
    pairs = [(int(p), int(c)) for p, children in hier_relation.items() for c in children]
    if not pairs:
        return jnp.float32(0.0)

    L, D = label_emb.shape
    L_pad = max(_SUBLANES, _round_up(L, _SUBLANES))
    D_pad = max(_LANES, _round_up(D, _LANES))

    dense_bytes = 4 * (L_pad * L_pad + L_pad * D_pad)
    if dense_bytes > _DENSE_REC_BYTES_LIMIT:
        # Large label sets: the dense O(L^2) Laplacian would not fit VMEM and wastes MXU work for
        # a sparse P-pair sum; fall back to a sparse gather in plain JAX (negligible vs. the BCE
        # sweep). TODO(synk): scalar-prefetched Pallas gather kernel for very large hierarchies.
        p_idx = jnp.array([p for p, _ in pairs], dtype=jnp.int32)
        c_idx = jnp.array([c for _, c in pairs], dtype=jnp.int32)
        e = label_emb.astype(jnp.float32)
        diff = jnp.take(e, p_idx, axis=0) - jnp.take(e, c_idx, axis=0)
        return jnp.sum(diff * diff)

    # Fold the static pair list into a tiny (L, L) pair Laplacian host-side (no runtime gather).
    W_np = np.zeros((L_pad, L_pad), dtype=np.float32)
    for p, c in pairs:
        W_np[p, p] += 1.0
        W_np[c, c] += 1.0
        W_np[p, c] -= 1.0
        W_np[c, p] -= 1.0
    W = jnp.asarray(W_np)
    emb = jnp.zeros((L_pad, D_pad), jnp.float32).at[:L, :D].set(label_emb.astype(jnp.float32))

    out = pl.pallas_call(
        _pair_laplacian_rec_kernel,
        out_shape=jax.ShapeDtypeStruct((1, 1), jnp.float32),
        in_specs=[pl.BlockSpec(memory_space=pltpu.VMEM),   # (L_pad, D_pad) embeddings, fetched once
                  pl.BlockSpec(memory_space=pltpu.VMEM)],  # (L_pad, L_pad) pair Laplacian
        out_specs=pl.BlockSpec(memory_space=pltpu.SMEM),
    )(emb, W)
    return out[0, 0]


# --------------------------------------------------------------------------------------------
# Top-level forward
# --------------------------------------------------------------------------------------------
def hierarchy_loss(logits, labels, label_emb, hier_relation, hier_weight):
    """Pallas-backed HierarchyLoss.forward (loss_fn = BCEWithLogitsLoss, mean reduction).

    logits, labels: (B, L) — any float dtype (bf16 recommended); upcast to f32 in-kernel.
    label_emb:      (L, D)
    hier_relation:  static python dict {parent_idx: [child_idx, ...]}
    hier_weight:    python float
    """
    bce_mean = _bce_with_logits_mean(logits, labels)
    rec = _hierarchy_recursive_term(label_emb, hier_relation)
    return bce_mean + jnp.float32(hier_weight) * rec


def _reference_loss(logits, labels, label_emb, hier_relation, hier_weight):
    # Pure-JAX reference mirroring the PyTorch forward (BCEWithLogitsLoss, mean reduction).
    x = logits.astype(jnp.float32)
    y = labels.astype(jnp.float32)
    bce = jnp.maximum(x, 0.0) - x * y + jnp.log1p(jnp.exp(-jnp.abs(x)))
    bce_mean = jnp.mean(bce)
    rec = 0.0
    for p, children in hier_relation.items():
        if len(children) == 0:
            continue
        cid = jnp.array(children, dtype=jnp.int32)
        diff = label_emb[p][None, :].astype(jnp.float32) - label_emb[cid].astype(jnp.float32)
        rec = rec + jnp.sum(diff * diff)
    return bce_mean + hier_weight * rec


if __name__ == "__main__":
    key = jax.random.PRNGKey(0)
    k1, k2, k3 = jax.random.split(key, 3)

    B, L, D = 4, 8, 32          # batch, num_labels, label embedding dim
    hier_weight = 0.1
    # Deterministic hierarchy: parent 0 -> {1,2,3}, parent 4 -> {5,6}, parent 7 -> {} (skipped)
    hier_relation = {0: [1, 2, 3], 4: [5, 6], 7: []}

    # bf16 transfer dtypes (halves HBM bytes); all accumulation is done in f32 inside the kernel.
    logits = jax.random.normal(k1, (B, L), dtype=jnp.float32).astype(jnp.bfloat16)
    labels = (jax.random.uniform(k2, (B, L)) > 0.5).astype(jnp.bfloat16)
    label_emb = jax.random.normal(k3, (L, D), dtype=jnp.float32)

    loss = hierarchy_loss(logits, labels, label_emb, hier_relation, hier_weight)
    loss = jax.block_until_ready(loss)

    ref = _reference_loss(logits, labels, label_emb, hier_relation, hier_weight)

    kind = _device_kind()
    if ("v6" in kind) or ("v7" in kind) or ("7x" in kind):
        # bf16 EUP path trades ~1e-3 relative error on the BCE term for ~2x transcendental rate.
        rtol, atol = 1e-2, 1e-3
    else:
        rtol, atol = 1e-4, 1e-5
    assert jnp.allclose(loss, ref, rtol=rtol, atol=atol), (loss, ref)

    print("KERNEL_OK")
</pallas_src>

<mosaic_0001>
module attributes {stable_mosaic.version = 11 : i64} {
  func.func @_bce_sum_kernel(%arg0: i32, %arg1: i32, %arg2: memref<8x128xbf16, #tpu.memory_space<vmem>>, %arg3: memref<8x128xbf16, #tpu.memory_space<vmem>>, %arg4: memref<1x8x128xf32, #tpu.memory_space<vmem>>, %arg5: memref<8x128xf32, #tpu.memory_space<vmem>>) attributes {dimension_semantics = [#tpu.dimension_semantics<parallel>, #tpu.dimension_semantics<arbitrary>], iteration_bounds = array<i64: 1, 1>, scalar_prefetch = 0 : i64, scratch_operands = 1 : i64, tpu.core_type = #tpu.core_type<tc>, window_params = [{transform_indices = @transform_0, window_bounds = array<i64: 8, 128>}, {transform_indices = @transform_1, window_bounds = array<i64: 8, 128>}, {transform_indices = @transform_2, window_bounds = array<i64: 1, 8, 128>}]} {
    %c0_i32 = arith.constant 0 : i32
    %0 = arith.cmpi eq, %arg1, %c0_i32 : i32
    %1 = arith.extui %0 : i1 to i32
    %c0_i32_0 = arith.constant 0 : i32
    %2 = arith.cmpi ne, %1, %c0_i32_0 : i32
    scf.if %2 {
      %cst_13 = arith.constant 0.000000e+00 : f32
      %39 = vector.broadcast %cst_13 : f32 to vector<8x128xf32>
      %c0_14 = arith.constant 0 : index
      %c0_15 = arith.constant 0 : index
      %40 = vector.load %arg5[%c0_14, %c0_15] : memref<8x128xf32, #tpu.memory_space<vmem>>, vector<8x128xf32>
      tpu.vector_store %arg5[%c0_14, %c0_15], %39 {strides = array<i32>} : memref<8x128xf32, #tpu.memory_space<vmem>>, vector<8x128xf32>,
    } else {
    }
    %c0 = arith.constant 0 : index
    %c0_1 = arith.constant 0 : index
    %3 = vector.load %arg2[%c0, %c0_1] : memref<8x128xbf16, #tpu.memory_space<vmem>>, vector<8x128xbf16>
    %4 = arith.extf %3 : vector<8x128xbf16> to vector<8x128xf32>
    %c0_2 = arith.constant 0 : index
    %c0_3 = arith.constant 0 : index
    %5 = vector.load %arg3[%c0_2, %c0_3] : memref<8x128xbf16, #tpu.memory_space<vmem>>, vector<8x128xbf16>
    %6 = arith.extf %5 : vector<8x128xbf16> to vector<8x128xf32>
    %7 = math.absf %4 : vector<8x128xf32>
    %cst = arith.constant 0.000000e+00 : f32
    %8 = vector.broadcast %cst : f32 to vector<8x128xf32>
    %9 = arith.subf %8, %7 : vector<8x128xf32>
    %10 = math.exp %9 : vector<8x128xf32>
    %11 = math.log1p %10 : vector<8x128xf32>
    %cst_4 = arith.constant 0.000000e+00 : f32
    %12 = vector.broadcast %cst_4 : f32 to vector<8x128xf32>
    %13 = arith.maximumf %4, %12 : vector<8x128xf32>
    %14 = arith.mulf %4, %6 : vector<8x128xf32>
    %15 = arith.subf %13, %14 : vector<8x128xf32>
    %16 = arith.addf %15, %11 : vector<8x128xf32>
    %17 = tpu.iota {dimensions = array<i32: 0>} : vector<8x128xi32>
    %18 = tpu.iota {dimensions = array<i32: 1>} : vector<8x128xi32>
    %c1_i32 = arith.constant 1 : i32
    %19 = arith.muli %arg0, %c1_i32 : i32
    %20 = arith.addi %19, %arg1 : i32
    %c8_i32 = arith.constant 8 : i32
    %21 = arith.muli %20, %c8_i32 : i32
    %22 = vector.broadcast %21 : i32 to vector<8x128xi32>
    %23 = arith.addi %22, %17 : vector<8x128xi32>
    %c128_i32 = arith.constant 128 : i32
    %24 = vector.broadcast %c128_i32 : i32 to vector<8x128xi32>
    %25 = arith.muli %23, %24 : vector<8x128xi32>
    %26 = arith.addi %25, %18 : vector<8x128xi32>
    %c32_i32 = arith.constant 32 : i32
    %27 = vector.broadcast %c32_i32 : i32 to vector<8x128xi32>
    %28 = arith.cmpi slt, %26, %27 : vector<8x128xi32>
    %cst_5 = arith.constant 0.000000e+00 : f32
    %29 = vector.broadcast %cst_5 : f32 to vector<8x128xf32>
    %30 = arith.select %28, %16, %29 : vector<8x128xi1>, vector<8x128xf32>
    %c0_6 = arith.constant 0 : index
    %c0_7 = arith.constant 0 : index
    %31 = vector.load %arg5[%c0_6, %c0_7] : memref<8x128xf32, #tpu.memory_space<vmem>>, vector<8x128xf32>
    %32 = vector.shape_cast %30 : vector<8x128xf32> to vector<1x8x128xf32>
    %cst_8 = arith.constant dense<0.000000e+00> : vector<8x128xf32>
    %33 = vector.multi_reduction <add>, %32, %cst_8 [0] : vector<1x8x128xf32> to vector<8x128xf32>
    %34 = arith.addf %31, %33 : vector<8x128xf32>
    %c0_9 = arith.constant 0 : index
    %c0_10 = arith.constant 0 : index
    %35 = vector.load %arg5[%c0_9, %c0_10] : memref<8x128xf32, #tpu.memory_space<vmem>>, vector<8x128xf32>
    tpu.vector_store %arg5[%c0_9, %c0_10], %34 {strides = array<i32>} : memref<8x128xf32, #tpu.memory_space<vmem>>, vector<8x128xf32>,
    %c0_i32_11 = arith.constant 0 : i32
    %36 = arith.cmpi eq, %arg1, %c0_i32_11 : i32
    %37 = arith.extui %36 : i1 to i32
    %c0_i32_12 = arith.constant 0 : i32
    %38 = arith.cmpi ne, %37, %c0_i32_12 : i32
    scf.if %38 {
      %c0_13 = arith.constant 0 : index
      %c0_14 = arith.constant 0 : index
      %39 = vector.load %arg5[%c0_13, %c0_14] : memref<8x128xf32, #tpu.memory_space<vmem>>, vector<8x128xf32>
      %c0_15 = arith.constant 0 : index
      %c0_16 = arith.constant 0 : index
      %c0_17 = arith.constant 0 : index
      %40 = vector.load %arg4[%c0_15, %c0_16, %c0_17] : memref<1x8x128xf32, #tpu.memory_space<vmem>>, vector<1x8x128xf32>
      %41 = vector.shape_cast %40 : vector<1x8x128xf32> to vector<8x128xf32>
      %42 = vector.shape_cast %39 : vector<8x128xf32> to vector<1x8x128xf32>
      tpu.vector_store %arg4[%c0_15, %c0_16, %c0_17], %42 {strides = array<i32>} : memref<1x8x128xf32, #tpu.memory_space<vmem>>, vector<1x8x128xf32>,
    } else {
    }
    return
  }
  func.func @transform_0(%arg0: i32, %arg1: i32) -> (i32, i32) {
    %c1_i32 = arith.constant 1 : i32
    %0 = arith.muli %arg0, %c1_i32 : i32
    %1 = arith.addi %0, %arg1 : i32
    %c0_i32 = arith.constant 0 : i32
    %c0_i32_0 = arith.constant 0 : i32
    return %1, %c0_i32 : i32, i32
  }
  func.func @transform_1(%arg0: i32, %arg1: i32) -> (i32, i32) {
    %c1_i32 = arith.constant 1 : i32
    %0 = arith.muli %arg0, %c1_i32 : i32
    %1 = arith.addi %0, %arg1 : i32
    %c0_i32 = arith.constant 0 : i32
    %c0_i32_0 = arith.constant 0 : i32
    return %1, %c0_i32 : i32, i32
  }
  func.func @transform_2(%arg0: i32, %arg1: i32) -> (i32, i32, i32) {
    %c0_i32 = arith.constant 0 : i32
    %c0_i32_0 = arith.constant 0 : i32
    %c0_i32_1 = arith.constant 0 : i32
    return %arg0, %c0_i32, %c0_i32_0 : i32, i32, i32
  }
}

</mosaic_0001>

<bundles_post_ra>
// kernel: tpu_custom_call.1
= control target key start
LH: loop header
LB: loop body
LE: loop exit
PB: predicated region body
PF: predicated region fallthrough
CT: control target
= control target key end

     0   :  { %7 = vsyncpa [#allocation4], 0  ;;  %s207_s0 = inlined_call_operand.hbm [shape: bf16[8,128], index: 0, kind: input, shape index: {}]   ;;  %s208_s1 = inlined_call_operand.hbm [shape: bf16[8,128], index: 1, kind: input, shape index: {}]   ;;  %s209_s2 = inlined_call_operand.hbm [shape: f32[1,8,128], index: 2, kind: output, shape index: {}]  }
   0x1   :  { %8 = vsyncpa [#allocation7], 0 }
   0x2   :  { %9 = vsyncpa [#allocation5], 0  ;;  %s180_s9 = smov [#allocation3]   ;;  %s181_s11 = smov [#allocation6]  }
   0x3   :  { %s19_s10 = sshll.u32 %s180_s9, 4  ;;  %s32_s12 = sshll.u32 %s181_s11, 4  ;;  %s20_s10 = int_to_ptr.vmem [resolvable:$true] %s19_s10  ;;  %s33_s12 = int_to_ptr.vmem [resolvable:$true] %s32_s12 }
   0x4   :  { %s122_s13 = scalar_lea.vmem %s20_s10, 64  ;;  %p127_p1 = scmp.lt.s32.totalorder %s20_s10, %s20_s10 }
   0x5   :  { %p123_p0 = scmp.ne.s32.totalorder %s20_s10, %s122_s13  ;;  %p128_p2 = scmp.lt.s32.totalorder %s122_s13, %s122_s13 }
   0x7   :  { %p129_p3 = por %p128_p2, %p127_p1 }
   0x9   :  { %p130_p4 = pnand %p129_p3, %p123_p0 }
   0xb   :  { %133 = shalt.err (!%p130_p4)
}
   0xc   :  { %22 = dma.hbm_to_vmem [thread:$0]  %s207_s0, 64, %s20_s10, [#allocation4]  }
   0xd   :  { %s142_s16 = scalar_lea.vmem %s33_s12, 64  ;;  %p147_p6 = scmp.lt.s32.totalorder %s33_s12, %s33_s12 }
   0xe   :  { %p143_p5 = scmp.ne.s32.totalorder %s33_s12, %s142_s16  ;;  %p148_p7 = scmp.lt.s32.totalorder %s142_s16, %s142_s16 }
  0x10   :  { %p149_p8 = por %p148_p7, %p147_p6 }
  0x12   :  { %p150_p9 = pnand %p149_p8, %p143_p5 }
  0x14   :  { %153 = shalt.err (!%p150_p9)
}
  0x15   :  { %35 = dma.hbm_to_vmem [thread:$0]  %s208_s1, 64, %s33_s12, [#allocation7]  }
  0x16   :  { %174 = dma.done.wait [#allocation4], 64  }
  0x17   :  { %175 = vsyncadd [#allocation4], 4294967232 }
  0x18   :  { %176 = dma.done.wait [#allocation7], 64  }
  0x19   :  { %177 = vsyncadd [#allocation7], 4294967232  ;;  %v49_v0 = vld [vmem:[#allocation3] sm:$0xf]  ;;  %v70_v7 = vlaneseq  ;;  %v51_v8 = vld [vmem:[#allocation6] sm:$0xf] }
  0x1a   :  { %v50_v1 = vunpack.c.l.bf16 %v49_v0  ;;  %v52_v11 = vunpack.c.l.bf16 %v51_v8  ;;  %s182_s0 = smov [#allocation8]  }
  0x1b   :  { %v71_v10 = vshrl.u32 %v70_v7, 7  ;;  %v73_v13 = vand.u32 127, %v70_v7  ;;  %s97_s1 = sshll.u32 %s182_s0, 4  ;;  %s98_s1 = int_to_ptr.vmem [resolvable:$true] %s97_s1 }
  0x1c   :  { %v53_v2 = vand.u32 2147483647, %v50_v1  ;;  %v66_v16 = vmax.f32 %v50_v1, 0.0  ;;  %v67_v17 = vmul.f32 %v52_v11, %v50_v1  ;;  %s154_s19 = scalar_lea.vmem %s98_s1, 128  ;;  %p159_p11 = scmp.lt.s32.totalorder %s98_s1, %s98_s1 }
  0x1d   :  { %v78_v14 = vmul.u32 128, %v71_v10  ;;  %p155_p10 = scmp.ne.s32.totalorder %s98_s1, %s154_s19  ;;  %p160_p12 = scmp.lt.s32.totalorder %s154_s19, %s154_s19 }
  0x1e   :  { %v54_v3 = vsub.f32 0.0, %v53_v2  ;;  %v68_v21 = vsub.f32 %v66_v16, %v67_v17 }
  0x1f   :  { %v79_v19 = vadd.s32 %v78_v14, %v73_v13  ;;  %p161_p13 = por %p160_p12, %p159_p11 }
  0x20   :  { %v55_v4 = vmul.f32 1.442695, %v54_v3 }
  0x21   :  { %vm80_vm1 = vcmp.lt.s32.totalorder %v79_v19, 32  ;;  %p162_p0 = pnand %p161_p13, %p155_p10 }
  0x22   :  { %110 = vpow2.f32 %v55_v4 }
  0x2f   :  { %v111_v5 = vpop.eup %110 }
  0x30   :  { %v57_v6 = vadd.f32 1.0, %v111_v5  ;;  %v60_v9 = vmul.f32 -0.5, %v111_v5  ;;  %v63_v15 = vand.u32 2147483647, %v111_v5 }
  0x32   :  { %112 = vlog2.f32 %v57_v6  ;;  %v61_v12 = vadd.f32 1.0, %v60_v9  ;;  %vm64_vm0 = vcmp.lt.f32.partialorder %v63_v15, 0.0004427343 }
  0x34   :  { %v62_v18 = vmul.f32 %v111_v5, %v61_v12 }
  0x3f   :  { %v113_v20 = vpop.eup %112 }
  0x40   :  { %v59_v22 = vmul.f32 0.6931472, %v113_v20 }
  0x42   :  { %v65_v23 = vsel %vm64_vm0, %v62_v18, %v59_v22 }
  0x43   :  { %v69_v24 = vadd.f32 %v68_v21, %v65_v23 }
  0x45   :  { %v81_v25 = vsel %vm80_vm1, %v69_v24, 0.0 }
  0x46   :  { %90 = vst [vmem:[#allocation8] sm:$0xff] %v81_v25 }
  0x47   :  { %165 = shalt.err (!%p162_p0)
}
  0x48   :  { %100 = dma.vmem_to_hbm [thread:$0]  %s98_s1, 128, %s209_s2, [#allocation5]  }
  0x49   :  { %178 = dma.done.wait [#allocation5], 128  }
  0x4a   :  { %179 = vsyncadd [#allocation5], 4294967168 }
  0x4b   :  { %104 = vsyncpa [#allocation4], 1 }
  0x4c   :  { %105 = vsyncpa [#allocation7], 1 }
  0x4d   :  { %106 = vsyncpa [#allocation5], 1 }

</bundles_post_ra>
